<compile_context>
chip_gen: v7x
topology: tpu7x:2x2x1
jax: 0.10.0
libtpu: 0.0.40
codegen_flags: <defaults>
</compile_context>

<pallas_src>
import functools

import jax
import jax.numpy as jnp
from jax.experimental import pallas as pl
from jax.experimental.pallas import tpu as pltpu


def _round_up(v, m):
    return ((v + m - 1) // m) * m


def _choose_tile(hw, c, itemsize, target_bytes, max_lanes=16384):
    """Largest multiple-of-128 lane tile with (1, C, tile) block <= target_bytes."""
    hw128 = _round_up(hw, 128)
    by_bytes = (target_bytes // max(1, c * itemsize)) // 128 * 128
    return int(max(128, min(hw128, by_bytes, max_lanes)))


# ---------------------------------------------------------------------------
# Pass 1: streaming masked spatial sum.  Output block (1, C, 128) per (b, s)
# stays resident across the reduction (t) axis -- it IS the accumulator.
# ---------------------------------------------------------------------------
def _pool_kernel(x_ref, psum_ref, *, hw, tile):
    s = pl.program_id(1)                      # HW split index   ("parallel")
    t = pl.program_id(2)                      # tile within split ("arbitrary")
    n_t = pl.num_programs(2)

    @pl.when(t == 0)
    def _():
        psum_ref[...] = jnp.zeros_like(psum_ref)

    # Mask the ragged tail tile (and any fully out-of-range block coming from
    # split rounding, whose index_map is clamped): lanes with global spatial
    # position >= HW contribute zero.
    start = (s * n_t + t) * tile
    lane = jax.lax.broadcasted_iota(jnp.int32, x_ref.shape, 2)     # (1, C, tile)
    xb = jnp.where(start + lane < hw, x_ref[...].astype(jnp.float32), 0.0)

    # 128-lane-aligned VALU accumulation; the single cross-lane reduce is
    # deferred to the (tiny) XLA epilogue outside the streaming kernel.
    part = xb[:, :, 0:128]
    for k in range(1, tile // 128):
        part = part + xb[:, :, k * 128:(k + 1) * 128]
    psum_ref[...] += part


# ---------------------------------------------------------------------------
# Pass 2: broadcast the lane-replicated gate with pure 128-aligned stores.
# ---------------------------------------------------------------------------
def _broadcast_kernel(gate_ref, out_ref):
    g = gate_ref[...]                          # (1, C, 128), already out dtype
    for r in range(out_ref.shape[-1] // 128):
        out_ref[:, :, r * 128:(r + 1) * 128] = g


def channel_gate(x, params, *, tile_hw=None, hw_splits=2,
                 pool_block_bytes=4 * 1024 * 1024,
                 store_block_bytes=4 * 1024 * 1024):
    """x: (B, C, H, W).  Returns (B, C, H, W) = expanded channel gate."""
    B, C, H, W = x.shape
    if H != W:
        # TODO(synk): F.avg_pool2d(x, H, stride=H) + Flatten only feeds
        # Linear(C, ...) for square spatial inputs; non-square is unsupported.
        raise ValueError("channel_gate expects square spatial dims (H == W)")
    HW = H * W
    w1, b1, gamma, beta, mean, var, w2, b2 = params
    Hd = w1.shape[1]

    # ---- Fold eval-mode BatchNorm1d into the first Linear (host-side, free).
    scale = gamma * jax.lax.rsqrt(var + 1e-5)                 # (1, Hd)
    w1f = (w1 * scale).astype(jnp.float32)                    # (C, Hd)
    b1f = ((b1 - mean) * scale + beta).astype(jnp.float32)    # (1, Hd)
    w2f = w2.astype(jnp.float32)
    b2f = b2.astype(jnp.float32)

    itemsize = jnp.dtype(x.dtype).itemsize
    x2 = x.reshape(B, C, HW)                  # contiguous reshape, no copy

    # ---- Pass 1: partial spatial sums ----------------------------------
    tile1 = tile_hw if tile_hw is not None else _choose_tile(
        HW, C, itemsize, pool_block_bytes)
    hw_blocks = int(pl.cdiv(HW, tile1))
    splits = int(max(1, min(hw_splits, hw_blocks)))
    tiles_per_split = int(pl.cdiv(hw_blocks, splits))

    def x_index_map(b, s, t):
        blk = s * tiles_per_split + t
        # Clamp blocks created by split rounding; their contribution is zeroed
        # by the in-kernel mask.
        return (b, 0, jnp.minimum(blk, hw_blocks - 1))

    psum = pl.pallas_call(
        functools.partial(_pool_kernel, hw=HW, tile=tile1),
        out_shape=jax.ShapeDtypeStruct((B, C, splits * 128), jnp.float32),
        grid=(B, splits, tiles_per_split),
        in_specs=[pl.BlockSpec((1, C, tile1), x_index_map)],
        out_specs=pl.BlockSpec((1, C, 128), lambda b, s, t: (b, 0, s)),
        compiler_params=pltpu.CompilerParams(
            dimension_semantics=("parallel", "parallel", "arbitrary"),
            vmem_limit_bytes=32 * 1024 * 1024),
    )(x2)

    # ---- Tiny batched MLP (M = B) once, outside the streaming kernel ----
    pooled = jnp.sum(psum, axis=-1) * (1.0 / HW)              # (B, C) f32
    h = jnp.maximum(pooled @ w1f + b1f, 0.0)                  # (B, Hd)
    gate = (h @ w2f + b2f).astype(x.dtype)                    # (B, C)

    # Lane-replicate + pre-cast so pass 2 is pure aligned stores.
    gate_rep = jnp.broadcast_to(gate[:, :, None], (B, C, 128))

    # ---- Pass 2: expanded output (B, C, HW), large lane-dense stores ----
    tile2 = tile_hw if tile_hw is not None else _choose_tile(
        HW, C, itemsize, store_block_bytes)
    out = pl.pallas_call(
        _broadcast_kernel,
        out_shape=jax.ShapeDtypeStruct((B, C, HW), x.dtype),
        grid=(B, int(pl.cdiv(HW, tile2))),
        in_specs=[pl.BlockSpec((1, C, 128), lambda b, t: (b, 0, 0))],
        out_specs=pl.BlockSpec((1, C, tile2), lambda b, t: (b, 0, t)),
        compiler_params=pltpu.CompilerParams(
            dimension_semantics=("parallel", "parallel"),
            vmem_limit_bytes=32 * 1024 * 1024),
    )(gate_rep)

    return out.reshape(B, C, H, W)


# ---------------------------------------------------------------------------
# Parameter init (matches nn.Module shapes; Linear weights stored transposed)
# ---------------------------------------------------------------------------
def init_channel_gate_params(key, gate_channel, reduction_ratio=16):
    C = gate_channel
    Hd = gate_channel // reduction_ratio
    k1, k2, k3, k4, k5, k6, k7, k8 = jax.random.split(key, 8)

    lim1 = 1.0 / jnp.sqrt(jnp.float32(C))
    w1 = jax.random.uniform(k1, (C, Hd), jnp.float32, -lim1, lim1)
    b1 = jax.random.uniform(k2, (1, Hd), jnp.float32, -lim1, lim1)

    # BatchNorm1d(Hd), eval mode, with non-trivial stats so the fold is tested.
    gamma = 1.0 + 0.1 * jax.random.normal(k5, (1, Hd), jnp.float32)
    beta = 0.1 * jax.random.normal(k6, (1, Hd), jnp.float32)
    mean = 0.1 * jax.random.normal(k7, (1, Hd), jnp.float32)
    var = 1.0 + 0.1 * jax.random.uniform(k8, (1, Hd), jnp.float32)

    lim2 = 1.0 / jnp.sqrt(jnp.float32(Hd))
    w2 = jax.random.uniform(k3, (Hd, C), jnp.float32, -lim2, lim2)
    b2 = jax.random.uniform(k4, (1, C), jnp.float32, -lim2, lim2)

    return (w1, b1, gamma, beta, mean, var, w2, b2)


def channel_gate_ref(x, params):
    """Pure-JAX reference (BN applied explicitly, not folded)."""
    w1, b1, gamma, beta, mean, var, w2, b2 = params
    pooled = jnp.mean(x, axis=(2, 3))                      # (B, C)
    h = pooled @ w1 + b1
    h = (h - mean) * jax.lax.rsqrt(var + 1e-5) * gamma + beta
    h = jnp.maximum(h, 0.0)
    g = h @ w2 + b2                                        # (B, C)
    return jnp.broadcast_to(g[:, :, None, None], x.shape).astype(x.dtype)


if __name__ == "__main__":
    # gate_channel=32, reduction_ratio=16 -> hidden=2.  H=W=20 -> HW=400,
    # which is NOT a multiple of 128, so the masked ragged-tail path runs.
    B, C, H, W = 2, 32, 20, 20
    key = jax.random.PRNGKey(0)
    kx, kp = jax.random.split(key)

    x = jax.random.normal(kx, (B, C, H, W), jnp.float32)
    params = init_channel_gate_params(kp, gate_channel=C, reduction_ratio=16)

    ref = channel_gate_ref(x, params)

    # Default tiling (one big block per (b, split)) plus forced small-tile
    # configs that exercise multi-step accumulation, the masked tail tile,
    # the HW split across cores and the out-of-range block clamp.
    configs = (dict(),
               dict(tile_hw=128, hw_splits=2),
               dict(tile_hw=128, hw_splits=3))
    for cfg in configs:
        out = jax.block_until_ready(channel_gate(x, params, **cfg))
        assert out.shape == (B, C, H, W)
        assert jnp.allclose(out, ref, atol=1e-5, rtol=1e-5), f"mismatch ({cfg})"

    print("KERNEL_OK")
</pallas_src>

<mosaic_0001>
module attributes {stable_mosaic.version = 11 : i64} {
  func.func @_pool_kernel(%arg0: i32, %arg1: i32, %arg2: i32, %arg3: memref<1x32x512xf32, #tpu.memory_space<vmem>>, %arg4: memref<1x32x128xf32, #tpu.memory_space<vmem>>) attributes {dimension_semantics = [#tpu.dimension_semantics<parallel>, #tpu.dimension_semantics<parallel>, #tpu.dimension_semantics<arbitrary>], iteration_bounds = array<i64: 2, 1, 1>, scalar_prefetch = 0 : i64, scratch_operands = 0 : i64, tpu.core_type = #tpu.core_type<tc>, window_params = [{transform_indices = @transform_0, window_bounds = array<i64: 1, 32, 512>}, {transform_indices = @transform_1, window_bounds = array<i64: 1, 32, 128>}]} {
    %c0_i32 = arith.constant 0 : i32
    %0 = arith.cmpi eq, %arg2, %c0_i32 : i32
    %1 = arith.extui %0 : i1 to i32
    %c0_i32_0 = arith.constant 0 : i32
    %2 = arith.cmpi ne, %1, %c0_i32_0 : i32
    scf.if %2 {
      %cst_9 = arith.constant 0.000000e+00 : f32
      %24 = vector.broadcast %cst_9 : f32 to vector<1x32x128xf32>
      %c0_10 = arith.constant 0 : index
      %c0_11 = arith.constant 0 : index
      %c0_12 = arith.constant 0 : index
      %25 = vector.load %arg4[%c0_10, %c0_11, %c0_12] : memref<1x32x128xf32, #tpu.memory_space<vmem>>, vector<1x32x128xf32>
      tpu.vector_store %arg4[%c0_10, %c0_11, %c0_12], %24 {strides = array<i32>} : memref<1x32x128xf32, #tpu.memory_space<vmem>>, vector<1x32x128xf32>,
    } else {
    }
    %c1_i32 = arith.constant 1 : i32
    %3 = arith.muli %arg1, %c1_i32 : i32
    %4 = arith.addi %3, %arg2 : i32
    %c512_i32 = arith.constant 512 : i32
    %5 = arith.muli %4, %c512_i32 : i32
    %6 = tpu.iota {dimensions = array<i32: 2>} : vector<1x32x512xi32>
    %7 = vector.broadcast %5 : i32 to vector<1x32x512xi32>
    %8 = arith.addi %7, %6 : vector<1x32x512xi32>
    %c400_i32 = arith.constant 400 : i32
    %9 = vector.broadcast %c400_i32 : i32 to vector<1x32x512xi32>
    %10 = arith.cmpi slt, %8, %9 : vector<1x32x512xi32>
    %c0 = arith.constant 0 : index
    %c0_1 = arith.constant 0 : index
    %c0_2 = arith.constant 0 : index
    %11 = vector.load %arg3[%c0, %c0_1, %c0_2] : memref<1x32x512xf32, #tpu.memory_space<vmem>>, vector<1x32x512xf32>
    %cst = arith.constant 0.000000e+00 : f32
    %12 = vector.broadcast %cst : f32 to vector<1x32x512xf32>
    %13 = arith.select %10, %11, %12 : vector<1x32x512xi1>, vector<1x32x512xf32>
    %14 = vector.extract_strided_slice %13 {offsets = [0, 0, 0], sizes = [1, 32, 128], strides = [1, 1, 1]} : vector<1x32x512xf32> to vector<1x32x128xf32>
    %15 = vector.extract_strided_slice %13 {offsets = [0, 0, 128], sizes = [1, 32, 128], strides = [1, 1, 1]} : vector<1x32x512xf32> to vector<1x32x128xf32>
    %16 = arith.addf %14, %15 : vector<1x32x128xf32>
    %17 = vector.extract_strided_slice %13 {offsets = [0, 0, 256], sizes = [1, 32, 128], strides = [1, 1, 1]} : vector<1x32x512xf32> to vector<1x32x128xf32>
    %18 = arith.addf %16, %17 : vector<1x32x128xf32>
    %19 = vector.extract_strided_slice %13 {offsets = [0, 0, 384], sizes = [1, 32, 128], strides = [1, 1, 1]} : vector<1x32x512xf32> to vector<1x32x128xf32>
    %20 = arith.addf %18, %19 : vector<1x32x128xf32>
    %c0_3 = arith.constant 0 : index
    %c0_4 = arith.constant 0 : index
    %c0_5 = arith.constant 0 : index
    %21 = vector.load %arg4[%c0_3, %c0_4, %c0_5] : memref<1x32x128xf32, #tpu.memory_space<vmem>>, vector<1x32x128xf32>
    %22 = arith.addf %21, %20 : vector<1x32x128xf32>
    %c0_6 = arith.constant 0 : index
    %c0_7 = arith.constant 0 : index
    %c0_8 = arith.constant 0 : index
    %23 = vector.load %arg4[%c0_6, %c0_7, %c0_8] : memref<1x32x128xf32, #tpu.memory_space<vmem>>, vector<1x32x128xf32>
    tpu.vector_store %arg4[%c0_6, %c0_7, %c0_8], %22 {strides = array<i32>} : memref<1x32x128xf32, #tpu.memory_space<vmem>>, vector<1x32x128xf32>,
    return
  }
  func.func @transform_0(%arg0: i32, %arg1: i32, %arg2: i32) -> (i32, i32, i32) {
    %c1_i32 = arith.constant 1 : i32
    %0 = arith.muli %arg1, %c1_i32 : i32
    %1 = arith.addi %0, %arg2 : i32
    %c0_i32 = arith.constant 0 : i32
    %2 = arith.minsi %1, %c0_i32 : i32
    %c0_i32_0 = arith.constant 0 : i32
    %c0_i32_1 = arith.constant 0 : i32
    return %arg0, %c0_i32_0, %2 : i32, i32, i32
  }
  func.func @transform_1(%arg0: i32, %arg1: i32, %arg2: i32) -> (i32, i32, i32) {
    %c0_i32 = arith.constant 0 : i32
    %c0_i32_0 = arith.constant 0 : i32
    return %arg0, %c0_i32, %arg1 : i32, i32, i32
  }
}

</mosaic_0001>

<bundles_post_ra>
// kernel: tpu_custom_call.1
= control target key start
LH: loop header
LB: loop body
LE: loop exit
PB: predicated region body
PF: predicated region fallthrough
CT: control target
= control target key end

     0   :  { %6 = vsyncpa [#allocation3], 0  ;;  %s769_s0 = inlined_call_operand.hbm [shape: f32[2,32,400], index: 0, kind: input, shape index: {}]   ;;  %s770_s1 = inlined_call_operand.hbm [shape: f32[2,32,128], index: 1, kind: output, shape index: {}]  }
   0x1   :  { %8 = vsyncpa [#allocation3 + $0x1], 0 }
   0x2   :  { %9 = vsyncpa [#allocation4], 0 }
   0x3   :  { %11 = vsyncpa [#allocation4 + $0x1], 0  ;;  %s571_s6 = smov 0   ;;  %s573_s7 = smov 0  }
   0x4   :  { %s575_s8 = smov 0   ;;  %s577_s9 = smov 0  }
   0x5   :  { %s579_s10 = smov 0   ;;  %s581_s11 = smov 0  }
   0x6 LB: > { %s357_s12 = sadd.s32 4294967295, %s553_s11   ;;  %s358_s13 = sadd.s32 4294967294, %s553_s11   ;;  %s553_s11 = sphi %s581_s11, %s17_s11   ;;  %s549_s10 = sphi %s579_s10, %s785_s10   ;;  %s545_s9 = sphi %s577_s9, %s784_s9   ;;  %s541_s8 = sphi %s575_s8, %s783_s8   ;;  %s537_s7 = sphi %s573_s7, %s782_s7   ;;  %s533_s6 = sphi %s571_s6, %s781_s6  }
   0x7   : > { %s36_s14 = sadd.s32 1, %s549_s10  ;;  %s51_s15 = sadd.s32 1, %s541_s8 }
   0x8   : > { %p38_p0 = scmp.ge.s32.totalorder %s36_s14, 2  ;;  %p58_p1 = scmp.ne.s32.totalorder %s541_s8, %s537_s7 }
   0x9   : > { %p59_p2 = scmp.eq.s32.totalorder %s553_s11, 0  ;;  %p64_p3 = scmp.ne.s32.totalorder %s537_s7, %s533_s6 }
   0xa   : > { %s787_s14 = smov (%p38_p0, %s36_s14), 0  ;;  %p65_p5 = scmp.eq.s32.totalorder %s357_s12, 0 }
   0xb   : > { %p612_p4 = por %p59_p2, %p58_p1  ;;  %s46_s17 = ssub.s32 %s549_s10, %s787_s14 }
   0xc   : > { %p90_p6 = scmp.eq.s32.totalorder %s357_s12, 1  ;;  %p49_p7 = scmp.eq.s32.totalorder %s46_s17, 0 }
   0xd   : > { %p618_p8 = por %p65_p5, %p64_p3  ;;  %p96_p10 = scmp.eq.s32.totalorder %s358_s13, 1 }
   0xe   : > { %p622_p9 = por %p90_p6, %p58_p1  ;;  %p386_p13 = scmp.lt.s32.totalorder %s553_s11, 2 }
   0xf   : > { %s627_s20 = scalar_select %p49_p7, %s541_s8, %s51_s15  }
  0x10   : > { %s774_s19 = scalar_select %p622_p9, 1, 0 }
  0x11   : > { %p629_p11 = por %p96_p10, %p64_p3  ;;  %s116_s22 = sand.u32 1, %s541_s8  }
  0x12   : > { %s361_s23 = sshll.u32 %s116_s22, 7  ;;  %s372_s24 = sshll.u32 %s549_s10, 11 }
  0x13   : > { %s775_s21 = scalar_select %p629_p11, 1, 0 }
  0x14   : > { %s640_s27 = scalar_lea.hbm %s769_s0, %s372_s24  ;;  %s120_s28 = scalar_lea.vmem [#allocation2], %s361_s23 }
  0x15   : > { %s132_s29 = sshll.u32 %s120_s28, 4  ;;  %p646_p0 = pnand %p386_p13, %p612_p4  ;;  %s642_s29 = int_to_ptr.vmem [resolvable:$true] %s132_s29 }
  0x16   : > { %s651_s2 = scalar_lea.sflag [#allocation3], %s116_s22  ;;  %s441_s3 = scalar_lea.hbm %s640_s27, 2048 }
  0x17   : > { %p442_p2 = scmp.ne.s32.totalorder %s640_s27, %s441_s3  ;;  %p443_p3 = pneg %p646_p0 }
  0x18   : > { %s446_s12 = scalar_lea.hbm %s769_s0, 4096  ;;  %p447_p4 = scmp.lt.u32.totalorder %s640_s27, %s769_s0 }
  0x19   : > { %p444_p5 = pnand %p443_p3, %p442_p2  ;;  %p448_p7 = scmp.lt.u32.totalorder %s446_s12, %s441_s3 }
  0x1a   : > { %p450_p13 = scmp.lt.u32.totalorder %s441_s3, %s640_s27 }
  0x1b   : > { %p445_p6 = pneg %p444_p5  ;;  %p449_p10 = por %p448_p7, %p447_p4 }
  0x1d   : > { %p451_p12 = por %p450_p13, %p449_p10 }
  0x1f   : > { %p452_p1 = pnand %p451_p12, %p445_p6 }
  0x21   : > { %455 = shalt.err (!%p452_p1)
}
  0x22   : > { %s456_s16 = scalar_lea.vmem %s642_s29, 2048  ;;  %s555_s17 = smov [#allocation2]  }
  0x23   : > { %p457_p2 = scmp.ne.s32.totalorder %s642_s29, %s456_s16  ;;  %s461_s22 = sshll.u32 %s555_s17, 4  ;;  %s462_s22 = int_to_ptr.vmem [resolvable:$false] %s461_s22 }
  0x24   : > { %s463_s23 = scalar_lea.vmem %s462_s22, 4096  ;;  %p464_p9 = scmp.lt.s32.totalorder %s642_s29, %s462_s22 }
  0x25   : > { %p459_p5 = pnand %p457_p2, %p443_p3  ;;  %p465_p4 = scmp.lt.s32.totalorder %s463_s23, %s456_s16 }
  0x27   : > { %p460_p11 = pneg %p459_p5  ;;  %p466_p7 = por %p465_p4, %p464_p9 }
  0x29   : > { %p467_p10 = pnand %p466_p7, %p460_p11 }
  0x2b   : > { %470 = shalt.err (!%p467_p10)
}
  0x2c   : > { %s556_s24 = smov 512   ;;  %s557_s25 = smov 32  }
  0x2d   : > { %381 = dma.hbm_to_vmem [thread:$0]  (!%p646_p0), %s640_s27, 2048, %s642_s29, %s651_s2, %s556_s24, %s556_s24, %s557_s25  }
  0x2e   : > { %p140_p12 = scmp.lt.s32.totalorder %s553_s11, 3  ;;  %p777_p1 = scmp.ge.s32.totalorder %s553_s11, 1 }
  0x30   : > { %p141_p3 = pnand %p777_p1, %p140_p12 }
  0x31   : > { %s683_s26 = sand.u32 (!%p141_p3), 1, %s537_s7  }
  0x32   : > { %144 = sbr.rel (%p141_p3) target bundleno = 85 (0x55), region = 24  ;;  %s365_s28 = sshll.u32 (!%p141_p3), %s683_s26, 7 }
  0x33   : > { %s147_s3 = scalar_lea.sflag (!%p141_p3), [#allocation3], %s683_s26  ;;  %s687_s4 = scalar_lea.vmem (!%p141_p3), [#allocation2], %s365_s28 }
  0x39   : > { %524 = dma.done.wait (%p618_p8), %s147_s3, 2048  }
  0x3a   : > { %526 = vsyncadd (%p618_p8), %s147_s3, 4294965248  ;;  %v183_v0 = vlaneseq  ;;  %v197_v3 = vld [vmem:[%s687_s4] sm:$0xff]  ;;  %v198_v4 = vld [vmem:[%s687_s4 + $0x8] sm:$0xff]  ;;  %s366_s18 = sshll.u32 %s683_s26, 5  ;;  %s373_s27 = sshll.u32 %s545_s9, 9 }
  0x3b   : > { %v199_v5 = vld [vmem:[%s687_s4 + $0x10] sm:$0xff]  ;;  %v200_v6 = vld [vmem:[%s687_s4 + $0x18] sm:$0xff]  ;;  %v229_v7 = vadd.f32 %v198_v4, %v197_v3  ;;  %v201_v8 = vld [vmem:[%s687_s4 + $0x20] sm:$0xff]  ;;  %s168_s29 = scalar_lea.vmem [#allocation5], %s366_s18  ;;  %s718_s12 = scalar_lea.hbm %s770_s1, %s373_s27 }
  0x3c   : > { %v184_v1 = vand.u32 127, %v183_v0  ;;  %v202_v9 = vld [vmem:[%s687_s4 + $0x28] sm:$0xff]  ;;  %v203_v11 = vld [vmem:[%s687_s4 + $0x30] sm:$0xff]  ;;  %v204_v12 = vld [vmem:[%s687_s4 + $0x38] sm:$0xff]  ;;  %s268_s30 = sshll.u32 %s168_s29, 4  ;;  %s254_s13 = scalar_lea.sflag [#allocation4], %s683_s26  ;;  %s720_s30 = int_to_ptr.vmem [resolvable:$true] %s268_s30 }
  0x3d   : > { %v230_v13 = vadd.f32 %v202_v9, %v201_v8  ;;  %v205_v14 = vld [vmem:[%s687_s4 + $0x40] sm:$0xff]  ;;  %v233_v15 = vadd.f32 %v229_v7, %v199_v5  ;;  %v206_v17 = vld [vmem:[%s687_s4 + $0x48] sm:$0xff]  ;;  %v207_v18 = vld [vmem:[%s687_s4 + $0x50] sm:$0xff]  ;;  %s471_s9 = scalar_lea.vmem %s720_s30, 512  ;;  %p778_p9 = scmp.ne.s32.totalorder %s774_s19, 0 }
  0x3e   : > { %v187_v2 = vadd.s32 384, %v184_v1  ;;  %v208_v19 = vld [vmem:[%s687_s4 + $0x58] sm:$0xff]  ;;  %v231_v21 = vadd.f32 %v206_v17, %v205_v14  ;;  %v209_v22 = vld [vmem:[%s687_s4 + $0x60] sm:$0xff]  ;;  %v210_v23 = vld [vmem:[%s687_s4 + $0x68] sm:$0xff]  ;;  %p472_p8 = scmp.ne.s32.totalorder %s720_s30, %s471_s9  ;;  %s558_s15 = smov [#allocation5]  }
  0x3f   : > { %v234_v20 = vadd.f32 %v230_v13, %v203_v11  ;;  %v211_v24 = vld [vmem:[%s687_s4 + $0x70] sm:$0xff]  ;;  %v212_v27 = vld [vmem:[%s687_s4 + $0x78] sm:$0xff]  ;;  %v232_v28 = vadd.f32 %v210_v23, %v209_v22  ;;  %s475_s16 = sshll.u32 %s558_s15, 4  ;;  %s476_s16 = int_to_ptr.vmem [resolvable:$false] %s475_s16 }
  0x40   : > { %vm196_vm0 = vcmp.lt.s32.totalorder %v187_v2, 400  ;;  %v235_v30 = vadd.f32 %v231_v21, %v207_v18  ;;  %p473_p11 = pnand %p472_p8, %p778_p9  ;;  %s477_s17 = scalar_lea.vmem %s476_s16, 1024 }
  0x41   : > { %v216_v10 = vsel %vm196_vm0, %v200_v6, 0.0  ;;  %v220_v16 = vsel %vm196_vm0, %v204_v12, 0.0  ;;  %v224_v26 = vsel %vm196_vm0, %v208_v19, 0.0  ;;  %v228_v31 = vsel %vm196_vm0, %v212_v27, 0.0  ;;  %p478_p6 = scmp.lt.s32.totalorder %s720_s30, %s476_s16  ;;  %p479_p13 = scmp.lt.s32.totalorder %s477_s17, %s471_s9 }
  0x42   : > { %v237_v25 = vadd.f32 %v233_v15, %v216_v10  ;;  %v238_v29 = vadd.f32 %v234_v20, %v220_v16  ;;  %v236_v32 = vadd.f32 %v232_v28, %v211_v24  ;;  %v239_v33 = vadd.f32 %v235_v30, %v224_v26  ;;  %p474_p0 = pneg %p473_p11 }
  0x43   : > { %p480_p2 = por %p479_p13, %p478_p6 }
  0x44   : > { %249 = vst [vmem:[%s168_s29] sm:$0xff] %v237_v25  ;;  %v240_v34 = vadd.f32 %v236_v32, %v228_v31  ;;  %250 = vst [vmem:[%s168_s29 + $0x8] sm:$0xff] %v238_v29 }
  0x45   : > { %251 = vst [vmem:[%s168_s29 + $0x10] sm:$0xff] %v239_v33  ;;  %p481_p5 = pnand %p480_p2, %p474_p0 }
  0x46   : > { %252 = vst [vmem:[%s168_s29 + $0x18] sm:$0xff] %v240_v34 }
  0x47   : > { %484 = shalt.err (!%p481_p5)
}
  0x48   : > { %s485_s22 = scalar_lea.hbm %s718_s12, 512  ;;  %s489_s25 = scalar_lea.hbm %s770_s1, 1024 }
  0x49   : > { %p486_p4 = scmp.ne.s32.totalorder %s718_s12, %s485_s22  ;;  %p490_p12 = scmp.lt.u32.totalorder %s718_s12, %s770_s1 }
  0x4a   : > { %p491_p1 = scmp.lt.u32.totalorder %s489_s25, %s485_s22  ;;  %p493_p8 = scmp.lt.u32.totalorder %s485_s22, %s718_s12 }
  0x4b   : > { %p487_p7 = pnand %p486_p4, %p778_p9 }
  0x4c   : > { %p492_p3 = por %p491_p1, %p490_p12 }
  0x4d   : > { %p488_p10 = pneg %p487_p7 }
  0x4e   : > { %p494_p11 = por %p493_p8, %p492_p3 }
  0x50   : > { %p495_p0 = pnand %p494_p11, %p488_p10 }
  0x52   : > { %498 = shalt.err (!%p495_p0)
}
  0x53   : > { %s559_s4 = smov 128   ;;  %s560_s18 = smov 8  }
  0x54   : > { %376 = dma.vmem_to_hbm [thread:$0]  (%p778_p9), %s720_s30, 512, %s718_s12, %s254_s13, %s559_s4, %s559_s4, %s560_s18  }
  0x55 PF: > { %s283_s27 = sand.u32 1, %s533_s6   ;;  %p779_p6 = scmp.ne.s32.totalorder %s775_s21, 0 }
  0x56   : > { %p780_p13 = scmp.ge.s32.totalorder %s553_s11, 2  ;;  %s284_s29 = scalar_lea.sflag [#allocation4], %s283_s27 }
  0x58   : > { %p383_p2 = pnand %p780_p13, %p779_p6 }
  0x5a   : > { %528 = dma.done.wait (!%p383_p2), %s284_s29, 512  }
  0x5b   : > { %530 = vsyncadd (!%p383_p2), %s284_s29, 4294966784  ;;  %s17_s11 = sadd.s32 1, %s553_s11   ;;  %s781_s6 = smov %s537_s7 }
  0x5c   : > { %p14_p5 = scmp.ge.s32.totalorder %s17_s11, 4   ;;  %s782_s7 = smov %s541_s8 }
  0x5d   : > { %s783_s8 = smov %s627_s20  ;;  %s784_s9 = smov %s549_s10 }
  0x5e   : > { %s785_s10 = smov %s787_s14  ;;  %16 = sbr.rel (!%p14_p5) target bundleno = 6 (0x6), region = 73 }
  0x65   :  { %289 = vsyncpa [#allocation3], 1 }
  0x66   :  { %291 = vsyncpa [#allocation3 + $0x1], 1 }
  0x67   :  { %292 = vsyncpa [#allocation4], 1 }
  0x68   :  { %294 = vsyncpa [#allocation4 + $0x1], 1 }

</bundles_post_ra>
